<compile_context>
chip_gen: v6e
topology: v6e:2x2x1
jax: 0.10.0
libtpu: 0.0.40
codegen_flags: <defaults>
</compile_context>

<pallas_src>
import functools

import jax
import jax.numpy as jnp
from jax.experimental import pallas as pl
from jax.experimental.pallas import tpu as pltpu


def _round_up(v, m):
    return pl.cdiv(v, m) * m


# ---------------------------------------------------------------------------
# Kernels
# ---------------------------------------------------------------------------
def _dist_head_packed_kernel(x_ref, w_ref, b_ref, out_ref, *, latent_dim):
    """Small-L path: one fused MXU dot, single packed lane-dense output.

    x_ref  : [Bt, D]     (f32 or bf16)
    w_ref  : [D,  Npad]  packed [W_loc | W_scale | 0], same dtype as x
    b_ref  : [1,  Npad]  packed [b_loc | b_scale | 0], f32
    out_ref: [Bt, Npad]  lane-dense; cols [0,L)=loc, [L,2L)=softplus(raw)
    """
    y = jnp.dot(x_ref[...], w_ref[...], preferred_element_type=jnp.float32)
    y = y + b_ref[...]
    # Lane-index select keeps the store unmasked/dense.  For tiny L the scale
    # lanes share vregs with the loc lanes, so softplus over the whole block
    # is unavoidable; under the DMA-bound regime it is free filler.
    col = jax.lax.broadcasted_iota(jnp.int32, y.shape, 1)
    out_ref[...] = jnp.where(col >= latent_dim,
                             jax.nn.softplus(y), y).astype(out_ref.dtype)


def _dist_head_split_kernel(x_ref, w_ref, b_ref, loc_ref, scale_ref, *,
                            latent_dim):
    """Lane-aligned path (L % 128 == 0): two separate lane-dense [Bt, L]
    outputs; softplus only on the scale half (halves EUP work, no wrapper
    slicing)."""
    L = latent_dim
    y = jnp.dot(x_ref[...], w_ref[...], preferred_element_type=jnp.float32)
    y = y + b_ref[...]
    loc_ref[...] = y[:, :L].astype(loc_ref.dtype)
    scale_ref[...] = jax.nn.softplus(y[:, L:2 * L]).astype(scale_ref.dtype)


# ---------------------------------------------------------------------------
# Parameter packing (init-time; hoisted out of the forward per review)
# ---------------------------------------------------------------------------
def pack_dist_head_params(w_loc, b_loc, w_scale, b_scale, *,
                          matmul_dtype=jnp.float32):
    """Pack the two heads into one lane-dense weight [D, Npad] and bias
    [1, Npad]; Npad = round_up(2L, 128), columns [0,L)=loc, [L,2L)=scale.

    Call ONCE at parameter-init / checkpoint-load time, not per forward.
    """
    D, L = w_loc.shape
    n_pad = _round_up(2 * L, 128)
    w = jnp.zeros((D, n_pad), jnp.float32)
    w = w.at[:, :L].set(w_loc.astype(jnp.float32))
    w = w.at[:, L:2 * L].set(w_scale.astype(jnp.float32))
    b = jnp.zeros((1, n_pad), jnp.float32)
    b = b.at[:, :L].set(b_loc.reshape(1, L).astype(jnp.float32))
    b = b.at[:, L:2 * L].set(b_scale.reshape(1, L).astype(jnp.float32))
    # Bias stays f32: it is added after the f32 accumulation inside the kernel.
    return w.astype(matmul_dtype), b


def _default_batch_tile(batch):
    # HBM-bound kernel: 512-1024-row tiles reach ~85% of HBM roofline vs ~63%
    # at 256 (per-step overhead ~0.35 us amortizes over more bytes).  Also
    # target >=4 grid steps so v7x's 2 TensorCores both get work and the
    # pipeline has overlap; sublane-align to 8 rows.
    bt = _round_up(pl.cdiv(batch, 4), 8)
    return max(8, min(bt, 1024, _round_up(batch, 8)))


# ---------------------------------------------------------------------------
# Forward
# ---------------------------------------------------------------------------
def dist_module_forward(x, w_packed, b_packed, latent_dim, *,
                        batch_tile=None,
                        matmul_dtype=None,
                        out_dtype=jnp.float32,
                        return_packed=False):
    """Gaussian distribution-head forward.

    x        : [B, D]
    w_packed : [D, Npad]  from pack_dist_head_params (loc|scale|0 columns)
    b_packed : [1, Npad]  f32 packed bias
    Returns (loc, scale) each [B, L]; or, for the packed small-L path with
    return_packed=True, the single lane-dense [B, Npad] buffer (consumers
    index it lazily, avoiding two extra HBM passes in the wrapper).
    """
    B, D = x.shape
    d_w, n_pad = w_packed.shape
    assert d_w == D and 2 * latent_dim <= n_pad
    L = latent_dim

    if matmul_dtype is None:
        matmul_dtype = w_packed.dtype
    x_in = x if x.dtype == matmul_dtype else x.astype(matmul_dtype)
    w_in = w_packed if w_packed.dtype == matmul_dtype else w_packed.astype(matmul_dtype)

    bt = batch_tile if batch_tile is not None else _default_batch_tile(B)
    grid = (pl.cdiv(B, bt),)          # last tile may be ragged: Pallas masks it

    in_bytes = jnp.dtype(matmul_dtype).itemsize
    out_bytes = jnp.dtype(out_dtype).itemsize

    in_specs = [
        pl.BlockSpec((bt, D), lambda i: (i, 0)),      # x batch tile (pipelined)
        pl.BlockSpec((D, n_pad), lambda i: (0, 0)),   # packed W (VMEM-resident)
        pl.BlockSpec((1, n_pad), lambda i: (0, 0)),   # packed bias (resident)
        # NOTE: for very large D*Npad heads on v7x (64 MiB VMEM), add
        # pipeline_mode=pl.Buffered(1) to the constant-index W/bias specs (or
        # tile N with an f32 accumulator) to halve their double-buffered
        # footprint; unnecessary at these sizes.
    ]

    # Explicit VMEM budget with headroom (double-buffered inputs + outputs +
    # f32 intermediates), clipped to v7x's 64 MiB physical ceiling.
    vmem_needed = 2 * (bt * D * in_bytes + D * n_pad * in_bytes + n_pad * 4
                       + bt * n_pad * max(out_bytes, 4))
    vmem_limit = int(min(64 << 20, max(2 * vmem_needed + (4 << 20), 16 << 20)))

    compiler_params = pltpu.CompilerParams(
        dimension_semantics=("parallel",),   # shard batch tiles across v7x TCs
        vmem_limit_bytes=vmem_limit,
    )

    split = (L % 128 == 0) and (n_pad == 2 * L)

    if split:
        cost = pl.CostEstimate(
            flops=2 * B * D * n_pad,
            transcendentals=B * L,
            bytes_accessed=B * D * in_bytes + D * n_pad * in_bytes
            + n_pad * 4 + 2 * B * L * out_bytes)
        loc, scale = pl.pallas_call(
            functools.partial(_dist_head_split_kernel, latent_dim=L),
            out_shape=(jax.ShapeDtypeStruct((B, L), out_dtype),
                       jax.ShapeDtypeStruct((B, L), out_dtype)),
            grid_spec=pltpu.PrefetchScalarGridSpec(
                num_scalar_prefetch=0,
                grid=grid,
                in_specs=in_specs,
                out_specs=[pl.BlockSpec((bt, L), lambda i: (i, 0)),
                           pl.BlockSpec((bt, L), lambda i: (i, 0))],
            ),
            compiler_params=compiler_params,
            cost_estimate=cost,
        )(x_in, w_in, b_packed)
        return loc, scale

    cost = pl.CostEstimate(
        flops=2 * B * D * n_pad,
        transcendentals=B * n_pad,
        bytes_accessed=B * D * in_bytes + D * n_pad * in_bytes
        + n_pad * 4 + B * n_pad * out_bytes)
    out = pl.pallas_call(
        functools.partial(_dist_head_packed_kernel, latent_dim=L),
        out_shape=jax.ShapeDtypeStruct((B, n_pad), out_dtype),
        grid_spec=pltpu.PrefetchScalarGridSpec(
            num_scalar_prefetch=0,
            grid=grid,
            in_specs=in_specs,
            out_specs=pl.BlockSpec((bt, n_pad), lambda i: (i, 0)),
        ),
        compiler_params=compiler_params,
        cost_estimate=cost,
    )(x_in, w_in, b_packed)

    if return_packed:
        return out                          # lazy consumer indexing, no extra pass
    return out[:, :L], out[:, L:2 * L]      # convenience path (small callers)


# ---------------------------------------------------------------------------
# Reference + test
# ---------------------------------------------------------------------------
def _reference(x, w_loc, b_loc, w_scale, b_scale):
    loc = x @ w_loc + b_loc.reshape(1, -1)
    scale = jnp.logaddexp(x @ w_scale + b_scale.reshape(1, -1), 0.0)
    return loc, scale


if __name__ == "__main__":
    key = jax.random.PRNGKey(0)

    def make_params(k, D, L):
        kwl, kbl, kws, kbs = jax.random.split(k, 4)
        w_loc = jax.random.normal(kwl, (D, L), jnp.float32) * 0.1
        b_loc = jax.random.normal(kbl, (1, L), jnp.float32) * 0.1
        w_scale = jax.random.normal(kws, (D, L), jnp.float32) * 0.1
        b_scale = jax.random.normal(kbs, (1, L), jnp.float32) * 0.1
        return w_loc, b_loc, w_scale, b_scale

    # --- config 1: tiny latent dim -> packed lane-dense output path ---------
    B, D, L = 8, 32, 16
    kx, kp, key = jax.random.split(key, 3)
    x = jax.random.normal(kx, (B, D), jnp.float32)
    w_loc, b_loc, w_scale, b_scale = make_params(kp, D, L)
    # Packing happens ONCE at "init" time (hoisted out of the forward).
    w_packed, b_packed = pack_dist_head_params(w_loc, b_loc, w_scale, b_scale)

    packed = dist_module_forward(x, w_packed, b_packed, L, return_packed=True)
    jax.block_until_ready(packed)
    loc, scale = packed[:, :L], packed[:, L:2 * L]   # test-only consumer indexing

    ref_loc, ref_scale = _reference(x, w_loc, b_loc, w_scale, b_scale)
    assert loc.shape == (B, L) and scale.shape == (B, L)
    assert jnp.allclose(loc, ref_loc, atol=1e-5, rtol=1e-5)
    assert jnp.allclose(scale, ref_scale, atol=1e-5, rtol=1e-5)
    assert bool(jnp.all(scale > 0.0))   # valid distribution scale

    # --- config 2: lane-aligned latent dim -> split two-output path ---------
    B2, D2, L2 = 16, 32, 128
    kx2, kp2, key = jax.random.split(key, 3)
    x2 = jax.random.normal(kx2, (B2, D2), jnp.float32)
    params2 = make_params(kp2, D2, L2)
    w2_packed, b2_packed = pack_dist_head_params(*params2)

    loc2, scale2 = dist_module_forward(x2, w2_packed, b2_packed, L2)
    jax.block_until_ready((loc2, scale2))
    ref_loc2, ref_scale2 = _reference(x2, *params2)
    assert loc2.shape == (B2, L2) and scale2.shape == (B2, L2)
    assert jnp.allclose(loc2, ref_loc2, atol=1e-5, rtol=1e-5)
    assert jnp.allclose(scale2, ref_scale2, atol=1e-5, rtol=1e-5)
    assert bool(jnp.all(scale2 > 0.0))

    print("KERNEL_OK")
</pallas_src>

<mosaic_0001>
module attributes {stable_mosaic.version = 11 : i64} {
  func.func @_dist_head_packed_kernel(%arg0: i32, %arg1: memref<8x32xf32, #tpu.memory_space<vmem>>, %arg2: memref<32x128xf32, #tpu.memory_space<vmem>>, %arg3: memref<1x128xf32, #tpu.memory_space<vmem>>, %arg4: memref<8x128xf32, #tpu.memory_space<vmem>>) attributes {dimension_semantics = [#tpu.dimension_semantics<parallel>], iteration_bounds = array<i64: 1>, scalar_prefetch = 0 : i64, scratch_operands = 0 : i64, tpu.core_type = #tpu.core_type<tc>, window_params = [{transform_indices = @transform_0, window_bounds = array<i64: 8, 32>}, {pipeline_mode = #tpu.pipeline_mode<synchronous>, transform_indices = @transform_1, window_bounds = array<i64: 32, 128>}, {pipeline_mode = #tpu.pipeline_mode<synchronous>, transform_indices = @transform_2, window_bounds = array<i64: 1, 128>}, {transform_indices = @transform_3, window_bounds = array<i64: 8, 128>}]} {
    %c0 = arith.constant 0 : index
    %c0_0 = arith.constant 0 : index
    %0 = vector.load %arg1[%c0, %c0_0] : memref<8x32xf32, #tpu.memory_space<vmem>>, vector<8x32xf32>
    %c0_1 = arith.constant 0 : index
    %c0_2 = arith.constant 0 : index
    %1 = vector.load %arg2[%c0_1, %c0_2] : memref<32x128xf32, #tpu.memory_space<vmem>>, vector<32x128xf32>
    %cst = arith.constant dense<0.000000e+00> : vector<8x128xf32>
    %2 = tpu.matmul %0, %1, %cst {dimension_numbers = #tpu.dot_dimension_numbers<[1], [0], [0], [1], [0, 0, 1, 1], [], []>} : vector<8x32xf32>, vector<32x128xf32>, vector<8x128xf32> -> vector<8x128xf32>
    %c0_3 = arith.constant 0 : index
    %c0_4 = arith.constant 0 : index
    %3 = vector.load %arg3[%c0_3, %c0_4] : memref<1x128xf32, #tpu.memory_space<vmem>>, vector<1x128xf32>
    %4 = vector.broadcast %3 : vector<1x128xf32> to vector<8x128xf32>
    %5 = arith.addf %2, %4 : vector<8x128xf32>
    %6 = tpu.iota {dimensions = array<i32: 1>} : vector<8x128xi32>
    %c16_i32 = arith.constant 16 : i32
    %7 = vector.broadcast %c16_i32 : i32 to vector<8x128xi32>
    %8 = arith.cmpi sge, %6, %7 : vector<8x128xi32>
    %cst_5 = arith.constant 0.000000e+00 : f32
    %9 = vector.broadcast %cst_5 : f32 to vector<8x128xf32>
    %10 = arith.maximumf %5, %9 : vector<8x128xf32>
    %11 = vector.broadcast %cst_5 : f32 to vector<8x128xf32>
    %12 = arith.subf %5, %11 : vector<8x128xf32>
    %13 = arith.cmpf one, %12, %12 : vector<8x128xf32>
    %14 = vector.broadcast %cst_5 : f32 to vector<8x128xf32>
    %15 = arith.addf %5, %14 : vector<8x128xf32>
    %16 = math.absf %12 : vector<8x128xf32>
    %cst_6 = arith.constant 0.000000e+00 : f32
    %17 = vector.broadcast %cst_6 : f32 to vector<8x128xf32>
    %18 = arith.subf %17, %16 : vector<8x128xf32>
    %19 = math.exp %18 : vector<8x128xf32>
    %20 = math.log1p %19 : vector<8x128xf32>
    %21 = arith.addf %10, %20 : vector<8x128xf32>
    %22 = arith.select %13, %15, %21 : vector<8x128xi1>, vector<8x128xf32>
    %23 = arith.select %8, %22, %5 : vector<8x128xi1>, vector<8x128xf32>
    %c0_7 = arith.constant 0 : index
    %c0_8 = arith.constant 0 : index
    %24 = vector.load %arg4[%c0_7, %c0_8] : memref<8x128xf32, #tpu.memory_space<vmem>>, vector<8x128xf32>
    tpu.vector_store %arg4[%c0_7, %c0_8], %23 {strides = array<i32>} : memref<8x128xf32, #tpu.memory_space<vmem>>, vector<8x128xf32>,
    return
  }
  func.func @transform_0(%arg0: i32) -> (i32, i32) {
    %c0_i32 = arith.constant 0 : i32
    %c0_i32_0 = arith.constant 0 : i32
    return %arg0, %c0_i32 : i32, i32
  }
  func.func @transform_1(%arg0: i32) -> (i32, i32) {
    %c0_i32 = arith.constant 0 : i32
    %c0_i32_0 = arith.constant 0 : i32
    %c0_i32_1 = arith.constant 0 : i32
    return %c0_i32, %c0_i32_0 : i32, i32
  }
  func.func @transform_2(%arg0: i32) -> (i32, i32) {
    %c0_i32 = arith.constant 0 : i32
    %c0_i32_0 = arith.constant 0 : i32
    %c0_i32_1 = arith.constant 0 : i32
    return %c0_i32, %c0_i32_0 : i32, i32
  }
  func.func @transform_3(%arg0: i32) -> (i32, i32) {
    %c0_i32 = arith.constant 0 : i32
    %c0_i32_0 = arith.constant 0 : i32
    return %arg0, %c0_i32 : i32, i32
  }
}

</mosaic_0001>

<bundles_post_ra>
// kernel: tpu_custom_call.1
= control target key start
LH: loop header
LB: loop body
LE: loop exit
PB: predicated region body
PF: predicated region fallthrough
CT: control target
= control target key end

     0   :  { %8 = vsyncpa [#allocation3], 0  ;;  %s300_s0 = inlined_call_operand.hbm [shape: f32[8,32], index: 0, kind: input, shape index: {}]   ;;  %s301_s1 = inlined_call_operand.hbm [shape: f32[32,128], index: 1, kind: input, shape index: {}]   ;;  %s302_s2 = inlined_call_operand.vmem [shape: f32[1,128], index: 2, kind: input, shape index: {}]   ;;  %s303_s3 = inlined_call_operand.hbm [shape: f32[8,128], index: 3, kind: output, shape index: {}]  }
   0x1   :  { %9 = vsyncpa [#allocation6], 0 }
   0x2   :  { %10 = vsyncpa [#allocation4], 0  ;;  %s261_s12 = smov [#allocation2]   ;;  %s262_s14 = smov [#allocation5]  }
   0x3   :  { %s17_s13 = sshll.u32 %s261_s12, 4  ;;  %s26_s15 = sshll.u32 %s262_s14, 4  ;;  %s18_s13 = int_to_ptr.vmem [resolvable:$true] %s17_s13  ;;  %s27_s15 = int_to_ptr.vmem [resolvable:$true] %s26_s15 }
   0x4   :  { %s203_s16 = scalar_lea.vmem %s18_s13, 128  ;;  %p208_p1 = scmp.lt.s32.totalorder %s18_s13, %s18_s13 }
   0x5   :  { %p204_p0 = scmp.ne.s32.totalorder %s18_s13, %s203_s16  ;;  %p209_p2 = scmp.lt.s32.totalorder %s203_s16, %s203_s16 }
   0x7   :  { %p210_p3 = por %p209_p2, %p208_p1 }
   0x9   :  { %p211_p4 = pnand %p210_p3, %p204_p0 }
   0xb   :  { %214 = shalt.err (!%p211_p4)
}
   0xc   :  { %20 = dma.hbm_to_vmem [thread:$0]  %s300_s0, 128, %s18_s13, [#allocation3]  }
   0xd   :  { %s223_s19 = scalar_lea.vmem %s27_s15, 512  ;;  %p228_p6 = scmp.lt.s32.totalorder %s27_s15, %s27_s15 }
   0xe   :  { %p224_p5 = scmp.ne.s32.totalorder %s27_s15, %s223_s19  ;;  %p229_p7 = scmp.lt.s32.totalorder %s223_s19, %s223_s19 }
  0x10   :  { %p230_p8 = por %p229_p7, %p228_p6 }
  0x12   :  { %p231_p9 = pnand %p230_p8, %p224_p5 }
  0x14   :  { %234 = shalt.err (!%p231_p9)
}
  0x15   :  { %s263_s20 = smov 128   ;;  %s264_s21 = smov 8  }
  0x16   :  { %32 = dma.hbm_to_vmem [thread:$0]  %s301_s1, 512, %s27_s15, [#allocation6], %s263_s20, %s263_s20, %s264_s21  }
  0x17   :  { %255 = dma.done.wait [#allocation3], 128  }
  0x18   :  { %256 = vsyncadd [#allocation3], 4294967168 }
  0x19   :  { %257 = dma.done.wait [#allocation6], 512  }
  0x1a   :  { %258 = vsyncadd [#allocation6], 4294966784  ;;  %v265_v0 = vmov 0.0   ;;  %vm266_vm0 = vmmov 0   ;;  %v45_v1 = vld [vmem:[#allocation5 + $0x18] sm:$0xff]  ;;  %v44_v2 = vld [vmem:[#allocation5 + $0x10] sm:$0xff]  ;;  %v127_v16 = vlaneseq }
  0x1b   :  { %173 = vmatprep.subr.mxu0 %v265_v0  ;;  %181 = vmatprep.mubr.msk.f32.mxu0 %vm266_vm0, %v265_v0  ;;  %v43_v3 = vld [vmem:[#allocation5 + $0x8] sm:$0xff]  ;;  %v42_v4 = vld [vmem:[#allocation5] sm:$0xff]  ;;  %v41_v5 = vld [vmem:[#allocation2] sm:$0xff]  ;;  %vm53_vm1 = vcmask 261120  }
  0x1c   :  { %174 = vmatpush3.msra.mxu0 %v45_v1  ;;  %v166_v6 = vld [vmem:[%s302_s2] ss:$0 sm:$0xff]  ;;  %v128_v20 = vand.u32 127, %v127_v16  ;;  %s267_s2 = smov [#allocation7]  }
  0x1d   :  { %175 = vmatprep.subr.mxu0 %v265_v0  ;;  %s156_s24 = sshll.u32 %s267_s2, 4  ;;  %s157_s24 = int_to_ptr.vmem [resolvable:$true] %s156_s24 }
  0x1e   :  { %176 = vmatpush3.msra.mxu0 %v44_v2  ;;  %vm129_vm3 = vcmp.ge.s32.totalorder %v128_v20, 16  ;;  %s235_s25 = scalar_lea.vmem %s157_s24, 128  ;;  %p240_p11 = scmp.lt.s32.totalorder %s157_s24, %s157_s24 }
  0x1f   :  { %177 = vmatprep.subr.mxu0 %v265_v0  ;;  %p236_p10 = scmp.ne.s32.totalorder %s157_s24, %s235_s25  ;;  %p241_p12 = scmp.lt.s32.totalorder %s235_s25, %s235_s25 }
  0x20   :  { %178 = vmatpush3.msra.mxu0 %v43_v3 }
  0x21   :  { %179 = vmatprep.subr.mxu0 %v265_v0  ;;  %p242_p13 = por %p241_p12, %p240_p11 }
  0x22   :  { %180 = vmatpush3.msra.mxu0 %v42_v4 }
  0x23   :  { %182 = vmatmul.mubr.msk.f32.vlgmr.msra.gmra.mxu0 %vm53_vm1, %v41_v5  ;;  %p243_p0 = pnand %p242_p13, %p236_p10 }
  0xe3   :  { %v123_v7 = vpop.f32.mrf.mxu0 }
  0xe4   :  { %v124_v8 = vadd.f32 %v166_v6, %v123_v7 }
  0xe5   :  { %v183_v9 = vpop.f32.mrf.mxu0 }
  0xe6   :  { %v133_v10 = vand.u32 2147483647, %v124_v8  ;;  %v130_v23 = vmax.f32 %v124_v8, 0.0  ;;  %vm131_vm4 = vcmp.ne.f32.partialorder %v124_v8, %v124_v8 }
  0xe8   :  { %v134_v11 = vsub.f32 0.0, %v133_v10 }
  0xea   :  { %v135_v12 = vmul.f32 1.442695, %v134_v11 }
  0xec   :  { %191 = vpow2.f32 %v135_v12 }
  0xf9   :  { %v192_v13 = vpop.eup %191 }
  0xfa   :  { %v137_v14 = vadd.f32 1.0, %v192_v13  ;;  %v140_v15 = vmul.f32 -0.5, %v192_v13  ;;  %v143_v18 = vand.u32 2147483647, %v192_v13 }
  0xfc   :  { %193 = vlog2.f32 %v137_v14  ;;  %v141_v17 = vadd.f32 1.0, %v140_v15  ;;  %vm144_vm2 = vcmp.lt.f32.partialorder %v143_v18, 0.0004427343 }
  0xfe   :  { %v142_v22 = vmul.f32 %v192_v13, %v141_v17 }
 0x109   :  { %v194_v19 = vpop.eup %193 }
 0x10a   :  { %v139_v21 = vmul.f32 0.6931472, %v194_v19 }
 0x10c   :  { %v145_v24 = vsel %vm144_vm2, %v142_v22, %v139_v21 }
 0x10d   :  { %v146_v25 = vadd.f32 %v145_v24, %v130_v23 }
 0x10f   :  { %v147_v26 = vsel %vm131_vm4, %v124_v8, %v146_v25 }
 0x110   :  { %v148_v27 = vsel %vm129_vm3, %v147_v26, %v124_v8 }
 0x111   :  { %149 = vst [vmem:[#allocation7] sm:$0xff] %v148_v27 }
 0x112   :  { %246 = shalt.err (!%p243_p0)
}
 0x113   :  { %159 = dma.vmem_to_hbm [thread:$0]  %s157_s24, 128, %s303_s3, [#allocation4]  }
 0x114   :  { %259 = dma.done.wait [#allocation4], 128  }
 0x115   :  { %260 = vsyncadd [#allocation4], 4294967168 }
 0x116   :  { %163 = vsyncpa [#allocation3], 1 }
 0x117   :  { %164 = vsyncpa [#allocation6], 1 }
 0x118   :  { %165 = vsyncpa [#allocation4], 1 }

</bundles_post_ra>
